<compile_context>
chip_gen: v6e
topology: v6e:2x2x1
jax: 0.10.0
libtpu: 0.0.40
codegen_flags: <defaults>
</compile_context>

<pallas_src>
import functools

import jax
import jax.numpy as jnp
from jax import lax
from jax.experimental import pallas as pl
from jax.experimental.pallas import tpu as pltpu

_EPS = 1e-8            # torch.nn.CosineSimilarity default eps
_EPS2 = _EPS * _EPS    # rsqrt(max(s, eps^2)) == 1 / max(||x||, eps)


# ---------------------------------------------------------------------------
# Kernels
# ---------------------------------------------------------------------------
def _corr_sim_kernel(f1_ref, f2_ref, out_ref, acc_ref, *, hw, tile_hw,
                     needs_mask):
    """Per-(batch, HW-tile) cosine-similarity partial sums (no pooling)."""
    t = pl.program_id(1)
    last = pl.num_programs(1) - 1

    @pl.when(t == 0)
    def _():
        acc_ref[...] = jnp.zeros_like(acc_ref)

    x1 = f1_ref[...].astype(jnp.float32)   # (1, C, tile_hw)
    x2 = f2_ref[...].astype(jnp.float32)

    dot = jnp.sum(x1 * x2, axis=1)         # (1, tile_hw)  reduce over C (sublanes)
    s1 = jnp.sum(x1 * x1, axis=1)
    s2 = jnp.sum(x2 * x2, axis=1)
    sim = dot * lax.rsqrt(jnp.maximum(s1, _EPS2)) * lax.rsqrt(
        jnp.maximum(s2, _EPS2))

    if needs_mask:
        # Tail mask only on the last step; all other steps are mask-free.
        @pl.when(t < last)
        def _():
            acc_ref[...] += sim

        @pl.when(t == last)
        def _():
            lane = lax.broadcasted_iota(jnp.int32, (1, tile_hw), 1)
            acc_ref[...] += jnp.where(t * tile_hw + lane < hw, sim, 0.0)
    else:
        acc_ref[...] += sim

    @pl.when(t == last)
    def _():
        # one cross-lane reduce per batch; broadcast into a lane-dense block.
        out_ref[...] = jnp.broadcast_to(jnp.sum(acc_ref[...]), out_ref.shape)


def _corr_sim_pool_kernel(f1_ref, f2_ref, out_ref, acc_ref, *, hp, w, tile_hp,
                          needs_row_mask):
    """Fused 2x2 avg-pool + cosine similarity. Input block (1, C, tile_hp, 2W)."""
    t = pl.program_id(1)
    last = pl.num_programs(1) - 1

    @pl.when(t == 0)
    def _():
        acc_ref[...] = jnp.zeros_like(acc_ref)

    x1 = f1_ref[...].astype(jnp.float32)   # (1, C, tile_hp, 2W)
    x2 = f2_ref[...].astype(jnp.float32)

    # h-direction pool: lanes [0, W) hold row 2r, lanes [W, 2W) hold row 2r+1
    # (free reshape in the wrapper), so this is a contiguous-slice add.
    r1 = x1[..., :w] + x1[..., w:]
    r2 = x2[..., :w] + x2[..., w:]
    # w-direction pool: adjacent-lane sums via offset-1 slices; valid 2x2 pooled
    # values land at EVEN lane indices of the (W-1)-wide result.
    p1 = (r1[..., :-1] + r1[..., 1:]) * 0.25   # (1, C, tile_hp, W-1)
    p2 = (r2[..., :-1] + r2[..., 1:]) * 0.25

    dot = jnp.sum(p1 * p2, axis=1)             # (1, tile_hp, W-1)  reduce over C
    s1 = jnp.sum(p1 * p1, axis=1)
    s2 = jnp.sum(p2 * p2, axis=1)
    sim = dot * lax.rsqrt(jnp.maximum(s1, _EPS2)) * lax.rsqrt(
        jnp.maximum(s2, _EPS2))

    # Even-lane selection is structural (one tiny (1,1,W-1) iota + one select);
    # it also silently drops the unpaired last column when W is odd.
    lane = lax.broadcasted_iota(jnp.int32, (1, 1, w - 1), 2)
    even = (lane % 2) == 0

    if needs_row_mask:
        @pl.when(t < last)
        def _():
            acc_ref[...] += jnp.where(even, sim, 0.0)

        @pl.when(t == last)
        def _():
            row = lax.broadcasted_iota(jnp.int32, (1, tile_hp, 1), 1)
            valid = jnp.logical_and(even, t * tile_hp + row < hp)
            acc_ref[...] += jnp.where(valid, sim, 0.0)
    else:
        acc_ref[...] += jnp.where(even, sim, 0.0)

    @pl.when(t == last)
    def _():
        out_ref[...] = jnp.broadcast_to(jnp.sum(acc_ref[...]), out_ref.shape)


# ---------------------------------------------------------------------------
# Tiling / VMEM budgeting (accounts for f32 up-cast temporaries, per review)
# ---------------------------------------------------------------------------
def _live_bytes_per_elem(itemsize):
    # 2 inputs x 2 pipeline buffers (input dtype) + ~4 f32 in-kernel temporaries.
    return 4 * itemsize + 16


def _vmem_limit(live_bytes):
    # Explicit scoped-VMEM limit: 2x headroom over the live estimate, floored
    # above v5e's 16 MiB default and capped at 48 MiB (v7x has 64 MiB/TC).
    return int(min(48 << 20, max(32 << 20, 2 * live_bytes)))


def _choose_tile_hw(hw, c, itemsize, budget_bytes, max_tile):
    per_elem = _live_bytes_per_elem(itemsize)
    tile = budget_bytes // (max(c, 1) * per_elem)
    tile = int(min(max(tile, 128), max_tile))
    if hw <= tile:
        return hw                      # full-extent lane dim: always legal
    return max((tile // 128) * 128, 128)


def _choose_tile_hp(hp, c, lanes, itemsize, budget_bytes, max_rows=1024):
    per_elem = _live_bytes_per_elem(itemsize)
    rows = budget_bytes // (max(c, 1) * max(lanes, 1) * per_elem)
    rows = int(min(rows, hp, max_rows))
    if rows >= hp:
        return hp                      # full extent: legal regardless of value
    rows = (rows // 8) * 8             # sublane-dim blocks must be multiples of 8
    if rows < 8:
        return None                    # even the minimum legal tile blows budget
    return rows


# ---------------------------------------------------------------------------
# pallas_call wrappers
# ---------------------------------------------------------------------------
def _corr_sim_sum_flat(f1, f2, *, max_tile, budget_bytes):
    """Sum of per-position cosine similarities for (B, C, HW) inputs."""
    b, c, hw = f1.shape
    itemsize = f1.dtype.itemsize
    tile_hw = _choose_tile_hw(hw, c, itemsize, budget_bytes, max_tile)
    n_tiles = pl.cdiv(hw, tile_hw)
    needs_mask = (hw % tile_hw) != 0

    kernel = functools.partial(_corr_sim_kernel, hw=hw, tile_hw=tile_hw,
                               needs_mask=needs_mask)
    live = c * tile_hw * _live_bytes_per_elem(itemsize)
    cost = pl.CostEstimate(
        flops=int(8 * b * c * hw),
        transcendentals=int(2 * b * hw),
        bytes_accessed=int(2 * b * c * hw * itemsize + b * 512),
    )
    partial = pl.pallas_call(
        kernel,
        out_shape=jax.ShapeDtypeStruct((b, 1, 128), jnp.float32),
        grid_spec=pltpu.PrefetchScalarGridSpec(
            num_scalar_prefetch=0,
            grid=(b, n_tiles),
            in_specs=[
                pl.BlockSpec((1, c, tile_hw), lambda bi, ti: (bi, 0, ti)),
                pl.BlockSpec((1, c, tile_hw), lambda bi, ti: (bi, 0, ti)),
            ],
            out_specs=pl.BlockSpec((1, 1, 128), lambda bi, ti: (bi, 0, 0)),
            scratch_shapes=[pltpu.VMEM((1, tile_hw), jnp.float32)],
        ),
        compiler_params=pltpu.CompilerParams(
            dimension_semantics=("parallel", "arbitrary"),
            vmem_limit_bytes=_vmem_limit(live)),
        cost_estimate=cost,
    )(f1, f2)
    return jnp.sum(partial[:, 0, 0])


def _corr_sim_sum_pooled(f1, f2, *, tile_hp, budget_bytes):
    """Fused 2x2-pool + cosine-sim sum for (B, C, Hp, 2W) inputs."""
    del budget_bytes  # tile_hp already chosen from it
    b, c, hp, w2 = f1.shape
    w = w2 // 2
    itemsize = f1.dtype.itemsize
    n_tiles = pl.cdiv(hp, tile_hp)
    needs_row_mask = (hp % tile_hp) != 0

    kernel = functools.partial(_corr_sim_pool_kernel, hp=hp, w=w,
                               tile_hp=tile_hp, needs_row_mask=needs_row_mask)
    live = c * tile_hp * w2 * _live_bytes_per_elem(itemsize)
    cost = pl.CostEstimate(
        flops=int(14 * b * c * hp * w),
        transcendentals=int(2 * b * hp * (w // 2)),
        bytes_accessed=int(2 * b * c * hp * w2 * itemsize + b * 512),
    )
    partial = pl.pallas_call(
        kernel,
        out_shape=jax.ShapeDtypeStruct((b, 1, 128), jnp.float32),
        grid_spec=pltpu.PrefetchScalarGridSpec(
            num_scalar_prefetch=0,
            grid=(b, n_tiles),
            in_specs=[
                pl.BlockSpec((1, c, tile_hp, w2), lambda bi, ti: (bi, 0, ti, 0)),
                pl.BlockSpec((1, c, tile_hp, w2), lambda bi, ti: (bi, 0, ti, 0)),
            ],
            out_specs=pl.BlockSpec((1, 1, 128), lambda bi, ti: (bi, 0, 0)),
            scratch_shapes=[pltpu.VMEM((1, tile_hp, w - 1), jnp.float32)],
        ),
        compiler_params=pltpu.CompilerParams(
            dimension_semantics=("parallel", "arbitrary"),
            vmem_limit_bytes=_vmem_limit(live)),
        cost_estimate=cost,
    )(f1, f2)
    return jnp.sum(partial[:, 0, 0])


# ---------------------------------------------------------------------------
# Public API
# ---------------------------------------------------------------------------
def _avg_pool_2x2(x):
    # Fallback / reference pool: matches F.avg_pool2d(k=2, s=2) incl. floor.
    b, c, h, w = x.shape
    hp, wp = h // 2, w // 2
    x = x[:, :, :2 * hp, :2 * wp].astype(jnp.float32)
    return x.reshape(b, c, hp, 2, wp, 2).mean(axis=(3, 5))


def corr_loss(fmap1, fmap2, *, pool=False, max_tile=32768,
              budget_bytes=24 << 20):
    """Pallas implementation of CorrLoss.forward. Inputs are NCHW."""
    b, c, h, w = fmap1.shape

    if pool:
        hp, wp = h // 2, w // 2
        tile_hp = None
        if hp >= 1 and wp >= 1:
            tile_hp = _choose_tile_hp(hp, c, 2 * w, fmap1.dtype.itemsize,
                                      budget_bytes)
        if tile_hp is not None:
            if h % 2:                          # floor-pool drops the trailing row
                fmap1 = fmap1[:, :, :2 * hp, :]
                fmap2 = fmap2[:, :, :2 * hp, :]
            # 'b c (hp 2) w -> b c hp (2 w)' is a free reshape: lanes [0, W)
            # hold row 2r, lanes [W, 2W) hold row 2r+1 of each pooled row pair.
            f1 = fmap1.reshape(b, c, hp, 2 * w)
            f2 = fmap2.reshape(b, c, hp, 2 * w)
            total = _corr_sim_sum_pooled(f1, f2, tile_hp=tile_hp,
                                         budget_bytes=budget_bytes)
            return 1.0 - total / jnp.float32(b * hp * wp)
        # Fallback for degenerate / VMEM-busting shapes: pre-pool in f32 in JAX,
        # then run the flat kernel on the pooled maps.
        fmap1 = _avg_pool_2x2(fmap1)
        fmap2 = _avg_pool_2x2(fmap2)
        b, c, h, w = fmap1.shape

    hw = h * w
    # 'b c h w -> b c (h w)' is a free reshape (no transpose, no extra traffic).
    f1 = fmap1.reshape(b, c, hw)
    f2 = fmap2.reshape(b, c, hw)
    total = _corr_sim_sum_flat(f1, f2, max_tile=max_tile,
                               budget_bytes=budget_bytes)
    return 1.0 - total / jnp.float32(b * hw)


# ---------------------------------------------------------------------------
# Reference + tests
# ---------------------------------------------------------------------------
def _corr_loss_ref(fmap1, fmap2, pool=False):
    if pool:
        fmap1 = _avg_pool_2x2(fmap1)
        fmap2 = _avg_pool_2x2(fmap2)
    b, c, h, w = fmap1.shape
    f1 = jnp.transpose(fmap1.reshape(b, c, h * w), (0, 2, 1)).astype(jnp.float32)
    f2 = jnp.transpose(fmap2.reshape(b, c, h * w), (0, 2, 1)).astype(jnp.float32)
    dot = jnp.sum(f1 * f2, axis=-1)
    n1 = jnp.sqrt(jnp.sum(f1 * f1, axis=-1))
    n2 = jnp.sqrt(jnp.sum(f2 * f2, axis=-1))
    sim = dot / (jnp.maximum(n1, _EPS) * jnp.maximum(n2, _EPS))
    return 1.0 - sim.mean()


if __name__ == "__main__":
    key = jax.random.PRNGKey(0)
    k1, k2, k3, k4, k5, k6 = jax.random.split(key, 6)

    # NCHW, small shapes: batch=2, channels=4, spatial=16x16
    fmap1 = jax.random.normal(k1, (2, 4, 16, 16), dtype=jnp.float32)
    fmap2 = jax.random.normal(k2, (2, 4, 16, 16), dtype=jnp.float32)

    loss = jax.block_until_ready(corr_loss(fmap1, fmap2, pool=False))
    ref = _corr_loss_ref(fmap1, fmap2, pool=False)
    assert jnp.allclose(loss, ref, atol=1e-5, rtol=1e-5), (loss, ref)

    # fused 2x2-pool path (pool=True in the module ctor)
    loss_p = jax.block_until_ready(corr_loss(fmap1, fmap2, pool=True))
    ref_p = _corr_loss_ref(fmap1, fmap2, pool=True)
    assert jnp.allclose(loss_p, ref_p, atol=1e-5, rtol=1e-5), (loss_p, ref_p)

    # flat path with a masked tail tile: hw=144 with 128-wide tiles
    fmap3 = jax.random.normal(k3, (2, 4, 12, 12), dtype=jnp.float32)
    fmap4 = jax.random.normal(k4, (2, 4, 12, 12), dtype=jnp.float32)
    loss_m = jax.block_until_ready(corr_loss(fmap3, fmap4, max_tile=128))
    ref_m = _corr_loss_ref(fmap3, fmap4)
    assert jnp.allclose(loss_m, ref_m, atol=1e-5, rtol=1e-5), (loss_m, ref_m)

    # fused pool with a masked row tail (hp=12, tile_hp=8) and odd W (col drop)
    fmap5 = jax.random.normal(k5, (2, 4, 24, 15), dtype=jnp.float32)
    fmap6 = jax.random.normal(k6, (2, 4, 24, 15), dtype=jnp.float32)
    loss_pm = jax.block_until_ready(
        corr_loss(fmap5, fmap6, pool=True, budget_bytes=40_000))
    ref_pm = _corr_loss_ref(fmap5, fmap6, pool=True)
    assert jnp.allclose(loss_pm, ref_pm, atol=1e-5, rtol=1e-5), (loss_pm, ref_pm)

    print("KERNEL_OK")
</pallas_src>

<mosaic_0001>
module attributes {stable_mosaic.version = 11 : i64} {
  func.func @_corr_sim_kernel(%arg0: i32, %arg1: i32, %arg2: memref<1x4x256xf32, #tpu.memory_space<vmem>>, %arg3: memref<1x4x256xf32, #tpu.memory_space<vmem>>, %arg4: memref<1x1x128xf32, #tpu.memory_space<vmem>>, %arg5: memref<1x256xf32, #tpu.memory_space<vmem>>) attributes {dimension_semantics = [#tpu.dimension_semantics<parallel>, #tpu.dimension_semantics<arbitrary>], iteration_bounds = array<i64: 2, 1>, scalar_prefetch = 0 : i64, scratch_operands = 1 : i64, tpu.core_type = #tpu.core_type<tc>, window_params = [{transform_indices = @transform_0, window_bounds = array<i64: 1, 4, 256>}, {transform_indices = @transform_1, window_bounds = array<i64: 1, 4, 256>}, {transform_indices = @transform_2, window_bounds = array<i64: 1, 1, 128>}]} {
    %c0_i32 = arith.constant 0 : i32
    %0 = arith.cmpi eq, %arg1, %c0_i32 : i32
    %1 = arith.extui %0 : i1 to i32
    %c0_i32_0 = arith.constant 0 : i32
    %2 = arith.cmpi ne, %1, %c0_i32_0 : i32
    scf.if %2 {
      %cst_16 = arith.constant 0.000000e+00 : f32
      %25 = vector.broadcast %cst_16 : f32 to vector<1x256xf32>
      %c0_17 = arith.constant 0 : index
      %c0_18 = arith.constant 0 : index
      %26 = vector.load %arg5[%c0_17, %c0_18] : memref<1x256xf32, #tpu.memory_space<vmem>>, vector<1x256xf32>
      tpu.vector_store %arg5[%c0_17, %c0_18], %25 {strides = array<i32>} : memref<1x256xf32, #tpu.memory_space<vmem>>, vector<1x256xf32>,
    } else {
    }
    %c0 = arith.constant 0 : index
    %c0_1 = arith.constant 0 : index
    %c0_2 = arith.constant 0 : index
    %3 = vector.load %arg2[%c0, %c0_1, %c0_2] : memref<1x4x256xf32, #tpu.memory_space<vmem>>, vector<1x4x256xf32>
    %c0_3 = arith.constant 0 : index
    %c0_4 = arith.constant 0 : index
    %c0_5 = arith.constant 0 : index
    %4 = vector.load %arg3[%c0_3, %c0_4, %c0_5] : memref<1x4x256xf32, #tpu.memory_space<vmem>>, vector<1x4x256xf32>
    %5 = arith.mulf %3, %4 : vector<1x4x256xf32>
    %cst = arith.constant dense<0.000000e+00> : vector<1x256xf32>
    %6 = vector.multi_reduction <add>, %5, %cst [1] : vector<1x4x256xf32> to vector<1x256xf32>
    %7 = arith.mulf %3, %3 : vector<1x4x256xf32>
    %cst_6 = arith.constant dense<0.000000e+00> : vector<1x256xf32>
    %8 = vector.multi_reduction <add>, %7, %cst_6 [1] : vector<1x4x256xf32> to vector<1x256xf32>
    %9 = arith.mulf %4, %4 : vector<1x4x256xf32>
    %cst_7 = arith.constant dense<0.000000e+00> : vector<1x256xf32>
    %10 = vector.multi_reduction <add>, %9, %cst_7 [1] : vector<1x4x256xf32> to vector<1x256xf32>
    %cst_8 = arith.constant 1.000000e-16 : f32
    %11 = vector.broadcast %cst_8 : f32 to vector<1x256xf32>
    %12 = arith.maximumf %8, %11 : vector<1x256xf32>
    %13 = math.rsqrt %12 : vector<1x256xf32>
    %14 = arith.mulf %6, %13 : vector<1x256xf32>
    %cst_9 = arith.constant 1.000000e-16 : f32
    %15 = vector.broadcast %cst_9 : f32 to vector<1x256xf32>
    %16 = arith.maximumf %10, %15 : vector<1x256xf32>
    %17 = math.rsqrt %16 : vector<1x256xf32>
    %18 = arith.mulf %14, %17 : vector<1x256xf32>
    %c0_10 = arith.constant 0 : index
    %c0_11 = arith.constant 0 : index
    %19 = vector.load %arg5[%c0_10, %c0_11] : memref<1x256xf32, #tpu.memory_space<vmem>>, vector<1x256xf32>
    %20 = arith.addf %19, %18 : vector<1x256xf32>
    %c0_12 = arith.constant 0 : index
    %c0_13 = arith.constant 0 : index
    %21 = vector.load %arg5[%c0_12, %c0_13] : memref<1x256xf32, #tpu.memory_space<vmem>>, vector<1x256xf32>
    tpu.vector_store %arg5[%c0_12, %c0_13], %20 {strides = array<i32>} : memref<1x256xf32, #tpu.memory_space<vmem>>, vector<1x256xf32>,
    %c0_i32_14 = arith.constant 0 : i32
    %22 = arith.cmpi eq, %arg1, %c0_i32_14 : i32
    %23 = arith.extui %22 : i1 to i32
    %c0_i32_15 = arith.constant 0 : i32
    %24 = arith.cmpi ne, %23, %c0_i32_15 : i32
    scf.if %24 {
      %c0_16 = arith.constant 0 : index
      %c0_17 = arith.constant 0 : index
      %25 = vector.load %arg5[%c0_16, %c0_17] : memref<1x256xf32, #tpu.memory_space<vmem>>, vector<1x256xf32>
      %26 = vector.shape_cast %25 : vector<1x256xf32> to vector<1x1x256xf32>
      %cst_18 = arith.constant dense<0.000000e+00> : vector<1xf32>
      %27 = vector.multi_reduction <add>, %26, %cst_18 [1, 2] : vector<1x1x256xf32> to vector<1xf32>
      %28 = vector.shape_cast %27 : vector<1xf32> to vector<1x1x1xf32>
      %29 = vector.extract %28[0, 0, 0] : f32 from vector<1x1x1xf32>
      %30 = vector.broadcast %29 : f32 to vector<1x1x128xf32>
      %c0_19 = arith.constant 0 : index
      %c0_20 = arith.constant 0 : index
      %c0_21 = arith.constant 0 : index
      %31 = vector.load %arg4[%c0_19, %c0_20, %c0_21] : memref<1x1x128xf32, #tpu.memory_space<vmem>>, vector<1x1x128xf32>
      tpu.vector_store %arg4[%c0_19, %c0_20, %c0_21], %30 {strides = array<i32>} : memref<1x1x128xf32, #tpu.memory_space<vmem>>, vector<1x1x128xf32>,
    } else {
    }
    return
  }
  func.func @transform_0(%arg0: i32, %arg1: i32) -> (i32, i32, i32) {
    %c0_i32 = arith.constant 0 : i32
    %c0_i32_0 = arith.constant 0 : i32
    return %arg0, %c0_i32, %arg1 : i32, i32, i32
  }
  func.func @transform_1(%arg0: i32, %arg1: i32) -> (i32, i32, i32) {
    %c0_i32 = arith.constant 0 : i32
    %c0_i32_0 = arith.constant 0 : i32
    return %arg0, %c0_i32, %arg1 : i32, i32, i32
  }
  func.func @transform_2(%arg0: i32, %arg1: i32) -> (i32, i32, i32) {
    %c0_i32 = arith.constant 0 : i32
    %c0_i32_0 = arith.constant 0 : i32
    %c0_i32_1 = arith.constant 0 : i32
    return %arg0, %c0_i32, %c0_i32_0 : i32, i32, i32
  }
}

</mosaic_0001>

<bundles_post_ra>
// kernel: tpu_custom_call.1
= control target key start
LH: loop header
LB: loop body
LE: loop exit
PB: predicated region body
PF: predicated region fallthrough
CT: control target
= control target key end

     0   :  { %7 = vsyncpa [#allocation4], 0  ;;  %s911_s0 = inlined_call_operand.hbm [shape: f32[2,4,256], index: 0, kind: input, shape index: {}]   ;;  %s912_s1 = inlined_call_operand.hbm [shape: f32[2,4,256], index: 1, kind: input, shape index: {}]   ;;  %s913_s2 = inlined_call_operand.hbm [shape: f32[2,1,128], index: 2, kind: output, shape index: {}]  }
   0x1   :  { %9 = vsyncpa [#allocation4 + $0x1], 0 }
   0x2   :  { %10 = vsyncpa [#allocation7], 0 }
   0x3   :  { %12 = vsyncpa [#allocation7 + $0x1], 0 }
   0x4   :  { %13 = vsyncpa [#allocation5], 0 }
   0x5   :  { %15 = vsyncpa [#allocation5 + $0x1], 0  ;;  %s727_s9 = smov 0   ;;  %s729_s10 = smov 0  }
   0x6   :  { %s731_s11 = smov 0   ;;  %s733_s12 = smov 0  }
   0x7   :  { %s735_s13 = smov 0   ;;  %s737_s14 = smov 0  }
   0x8 LB: > { %s468_s15 = sadd.s32 4294967295, %s705_s14   ;;  %s469_s16 = sadd.s32 4294967294, %s705_s14   ;;  %s705_s14 = sphi %s737_s14, %s21_s14   ;;  %s701_s13 = sphi %s735_s13, %s927_s13   ;;  %s697_s12 = sphi %s733_s12, %s926_s12   ;;  %s693_s11 = sphi %s731_s11, %s925_s11   ;;  %s689_s10 = sphi %s729_s10, %s924_s10   ;;  %s685_s9 = sphi %s727_s9, %s923_s9  }
   0x9   : > { %s33_s17 = sadd.s32 1, %s701_s13  ;;  %s42_s18 = sadd.s32 1, %s693_s11 }
   0xa   : > { %p35_p0 = scmp.ge.s32.totalorder %s33_s17, 2  ;;  %p49_p1 = scmp.ne.s32.totalorder %s693_s11, %s689_s10 }
   0xb   : > { %p50_p2 = scmp.eq.s32.totalorder %s705_s14, 0  ;;  %p55_p3 = scmp.ne.s32.totalorder %s689_s10, %s685_s9 }
   0xc   : > { %s929_s17 = smov (%p35_p0, %s33_s17), 0  ;;  %p56_p5 = scmp.eq.s32.totalorder %s468_s15, 0 }
   0xd   : > { %p768_p4 = por %p50_p2, %p49_p1  ;;  %s37_s20 = ssub.s32 %s701_s13, %s929_s17 }
   0xe   : > { %p107_p6 = scmp.eq.s32.totalorder %s468_s15, 1  ;;  %p40_p7 = scmp.eq.s32.totalorder %s37_s20, 0 }
   0xf   : > { %p774_p8 = por %p56_p5, %p55_p3  ;;  %p113_p10 = scmp.eq.s32.totalorder %s469_s16, 1 }
  0x10   : > { %p778_p9 = por %p107_p6, %p49_p1  ;;  %p505_p13 = scmp.lt.s32.totalorder %s705_s14, 2 }
  0x11   : > { %s783_s23 = scalar_select %p40_p7, %s693_s11, %s42_s18  }
  0x12   : > { %p785_p11 = por %p113_p10, %p55_p3  ;;  %s792_s25 = sand.u32 1, %s693_s11  }
  0x13   : > { %s472_s26 = sshll.u32 %s792_s25, 3  ;;  %s484_s27 = sshll.u32 %s701_s13, 7 }
  0x14   : > { %s145_s30 = scalar_lea.hbm %s911_s0, %s484_s27  ;;  %s137_s3 = scalar_lea.vmem [#allocation3], %s472_s26 }
  0x15   : > { %s147_s4 = sshll.u32 %s137_s3, 4  ;;  %p801_p0 = pnand %p505_p13, %p768_p4  ;;  %s148_s4 = int_to_ptr.vmem [resolvable:$true] %s147_s4 }
  0x16   : > { %p478_p1 = scmp.ge.s32.totalorder %s705_s14, 1  ;;  %p173_p2 = scmp.lt.s32.totalorder %s705_s14, 3 }
  0x17   : > { %s134_s6 = scalar_lea.sflag [#allocation4], %s792_s25  ;;  %p567_p3 = pneg %p801_p0 }
  0x18   : > { %s578_s7 = scalar_lea.vmem %s148_s4, 128  ;;  %s707_s8 = smov [#allocation3]  }
  0x19   : > { %p579_p5 = scmp.ne.s32.totalorder %s148_s4, %s578_s7  ;;  %s583_s15 = sshll.u32 %s707_s8, 4  ;;  %s584_s15 = int_to_ptr.vmem [resolvable:$false] %s583_s15 }
  0x1a   : > { %s585_s16 = scalar_lea.vmem %s584_s15, 256  ;;  %p586_p4 = scmp.lt.s32.totalorder %s148_s4, %s584_s15 }
  0x1b   : > { %p581_p6 = pnand %p579_p5, %p567_p3  ;;  %p587_p10 = scmp.lt.s32.totalorder %s585_s16, %s578_s7 }
  0x1d   : > { %p582_p7 = pneg %p581_p6  ;;  %p588_p13 = por %p587_p10, %p586_p4 }
  0x1f   : > { %p589_p12 = pnand %p588_p13, %p582_p7 }
  0x21   : > { %592 = shalt.err (!%p589_p12)
}
  0x22   : > { %497 = dma.hbm_to_vmem [thread:$0]  (!%p801_p0), %s145_s30, 128, %s148_s4, %s134_s6  }
  0x23   : > { %p819_p5 = pnand %p478_p1, %p173_p2  ;;  %s166_s28 = scalar_lea.hbm %s912_s1, %s484_s27 }
  0x24   : > { %s158_s29 = scalar_lea.vmem [#allocation6], %s472_s26  ;;  %s155_s7 = scalar_lea.sflag [#allocation7], %s792_s25 }
  0x25   : > { %s168_s3 = sshll.u32 %s158_s29, 4  ;;  %s708_s30 = smov [#allocation6]   ;;  %s169_s3 = int_to_ptr.vmem [resolvable:$true] %s168_s3 }
  0x26   : > { %s606_s8 = scalar_lea.vmem %s169_s3, 128  ;;  %s611_s4 = sshll.u32 %s708_s30, 4  ;;  %s612_s4 = int_to_ptr.vmem [resolvable:$false] %s611_s4 }
  0x27   : > { %p607_p12 = scmp.ne.s32.totalorder %s169_s3, %s606_s8  ;;  %s613_s6 = scalar_lea.vmem %s612_s4, 256 }
  0x28   : > { %p614_p1 = scmp.lt.s32.totalorder %s169_s3, %s612_s4  ;;  %p615_p2 = scmp.lt.s32.totalorder %s613_s6, %s606_s8 }
  0x29   : > { %p609_p6 = pnand %p607_p12, %p567_p3 }
  0x2a   : > { %p616_p4 = por %p615_p2, %p614_p1 }
  0x2b   : > { %p610_p7 = pneg %p609_p6 }
  0x2d   : > { %p617_p10 = pnand %p616_p4, %p610_p7 }
  0x2f   : > { %620 = shalt.err (!%p617_p10)
}
  0x30   : > { %500 = dma.hbm_to_vmem [thread:$0]  (!%p801_p0), %s166_s28, 128, %s169_s3, %s155_s7  }
  0x31   : > { %177 = sbr.rel (%p819_p5) target bundleno = 330 (0x14a), region = 28  ;;  %s835_s25 = sand.u32 (!%p819_p5), 1, %s689_s10  }
  0x32   : > { %s479_s26 = sshll.u32 (!%p819_p5), %s835_s25, 3  ;;  %s180_s27 = scalar_lea.sflag (!%p819_p5), [#allocation4], %s835_s25 }
  0x33   : > { %s183_s15 = scalar_lea.vmem (!%p819_p5), [#allocation3], %s479_s26 }
  0x36   : > { %672 = dma.done.wait (%p774_p8), %s180_s27, 128  }
  0x37   : > { %674 = vsyncadd (%p774_p8), %s180_s27, 4294967168  ;;  %s189_s5 = scalar_lea.sflag [#allocation7], %s835_s25  ;;  %s192_s16 = scalar_lea.vmem [#allocation6], %s479_s26 }
  0x38   : > { %676 = dma.done.wait (%p774_p8), %s189_s5, 128  }
  0x39   : > { %678 = vsyncadd (%p774_p8), %s189_s5, 4294967168  ;;  %v223_v0 = vlaneseq  ;;  %v709_v2 = vmov 0.0   ;;  %v228_v3 = vld [vmem:[%s183_s15] sm:$0xff]  ;;  %v229_v4 = vld [vmem:[%s192_s16] sm:$0xff]  ;;  %vm234_vm1 = vcmask 1043456   ;;  %vm337_vm2 = vcmask 1040384  }
  0x3a   : > { %v230_v5 = vmul.f32 %v229_v4, %v228_v3  ;;  %v249_v6 = vmul.f32 %v228_v3, %v228_v3  ;;  %v267_v7 = vmul.f32 %v229_v4, %v229_v4  ;;  %v710_v56 = vmov 1966171168   ;;  %s216_s21 = scalar_lea.vmem [#allocation8], %s835_s25  ;;  %s481_s19 = sshll.u32 %s697_s12, 4 }
  0x3b   : > { %vm849_vm0 = vcmp.lt.s32.totalorder %v223_v0, 256  ;;  %v302_v57 = vunpack.c.l.s4 %v710_v56  ;;  %s365_s18 = sshll.u32 %s216_s21, 4  ;;  %s363_s3 = scalar_lea.hbm %s913_s2, %s481_s19  ;;  %s866_s18 = int_to_ptr.vmem [resolvable:$true] %s365_s18 }
  0x3c   : > { %227 = vst.msk [vmem:[#allocation2] sm:$0x3] %vm849_vm0, %v709_v2  ;;  %v232_v8 = vcombine.high %v230_v5, %v230_v5  ;;  %v251_v9 = vcombine.high %v249_v6, %v249_v6  ;;  %v253_v10 = vsel %vm234_vm1, %v249_v6, 0.0  ;;  %v269_v12 = vcombine.high %v267_v7, %v267_v7  ;;  %s353_s7 = scalar_lea.sflag [#allocation5], %s835_s25  ;;  %s621_s8 = scalar_lea.vmem %s866_s18, 16 }
  0x3d   : > { %v254_v11 = vrot.slane %v253_v10, 4  ;;  %v271_v13 = vsel %vm234_vm1, %v267_v7, 0.0  ;;  %v235_v14 = vsel %vm234_vm1, %v230_v5, 0.0  ;;  %v303_v63 = vunpack.c.0.s8 %v302_v57  ;;  %p622_p8 = scmp.ne.s32.totalorder %s866_s18, %s621_s8  ;;  %s711_s30 = smov [#allocation8]  }
  0x3e   : > { %v260_v15 = vsel %vm234_vm1, %v251_v9, 0.0  ;;  %v272_v16 = vrot.slane %v271_v13, 4  ;;  %v242_v19 = vsel %vm234_vm1, %v232_v8, 0.0  ;;  %v278_v21 = vsel %vm234_vm1, %v269_v12, 0.0  ;;  %s625_s12 = sshll.u32 %s711_s30, 4  ;;  %s626_s12 = int_to_ptr.vmem [resolvable:$false] %s625_s12 }
  0x3f   : > { %v255_v17 = vadd.f32 %v254_v11, %v253_v10  ;;  %v261_v18 = vrot.slane %v260_v15, 4  ;;  %v236_v22 = vrot.slane %v235_v14, 4  ;;  %v279_v26 = vrot.slane %v278_v21, 4  ;;  %p623_p0 = pnand %p622_p8, %p778_p9  ;;  %s627_s4 = scalar_lea.vmem %s626_s12, 32 }
  0x40   : > { %v273_v20 = vadd.f32 %v272_v16, %v271_v13  ;;  %v243_v27 = vrot.slane %v242_v19, 4  ;;  %v305_v2 = vshrl.u32 %v223_v0, 7  ;;  %p628_p13 = scmp.lt.s32.totalorder %s866_s18, %s626_s12  ;;  %p629_p5 = scmp.lt.s32.totalorder %s627_s4, %s621_s8 }
  0x41   : > { %v256_v23 = vrot.slane %v255_v17, 2  ;;  %v262_v24 = vadd.f32 %v261_v18, %v260_v15  ;;  %v280_v31 = vadd.f32 %v279_v26, %v278_v21  ;;  %v237_v32 = vadd.f32 %v236_v22, %v235_v14  ;;  %p624_p3 = pneg %p623_p0 }
  0x42   : > { %v274_v25 = vrot.slane %v273_v20, 2  ;;  %v244_v37 = vadd.f32 %v243_v27, %v242_v19  ;;  %v306_v7 = vsub.s32 %v303_v63, %v305_v2  ;;  %v329_v13 = vsub.s32 0, %v305_v2  ;;  %p630_p12 = por %p629_p5, %p628_p13 }
  0x43   : > { %v257_v28 = vadd.f32 %v256_v23, %v255_v17  ;;  %v263_v29 = vrot.slane %v262_v24, 2  ;;  %v281_v36 = vrot.slane %v280_v31, 2  ;;  %v238_v42 = vrot.slane %v237_v32, 2  ;;  %v297_v10 = vld [vmem:[#allocation2] sm:$0x3] }
  0x44   : > { %v275_v30 = vadd.f32 %v274_v25, %v273_v20  ;;  %v245_v47 = vrot.slane %v244_v37, 2  ;;  %v333_v14 = vsub.s32 1, %v305_v2  ;;  %p631_p6 = pnand %p630_p12, %p624_p3 }
  0x45   : > { %v258_v33 = vrot.slane %v257_v28, 1  ;;  %v264_v34 = vadd.f32 %v263_v29, %v262_v24  ;;  %v282_v41 = vadd.f32 %v281_v36, %v280_v31  ;;  %v239_v50 = vadd.f32 %v238_v42, %v237_v32 }
  0x46   : > { %v276_v35 = vrot.slane %v275_v30, 1  ;;  %v246_v52 = vadd.f32 %v245_v47, %v244_v37 }
  0x47   : > { %v259_v38 = vadd.f32 %v258_v33, %v257_v28  ;;  %v265_v39 = vrot.slane %v264_v34, 1  ;;  %v283_v45 = vrot.slane %v282_v41, 1  ;;  %v240_v53 = vrot.slane %v239_v50, 1 }
  0x48   : > { %v277_v40 = vadd.f32 %v276_v35, %v275_v30  ;;  %v247_v54 = vrot.slane %v246_v52, 1 }
  0x49   : > { %v266_v43 = vadd.f32 %v265_v39, %v264_v34  ;;  %v285_v44 = vmax.f32 %v259_v38, 1e-16  ;;  %v284_v49 = vadd.f32 %v283_v45, %v282_v41  ;;  %v241_v55 = vadd.f32 %v240_v53, %v239_v50 }
  0x4a   : > { %v291_v46 = vmax.f32 %v277_v40, 1e-16  ;;  %v248_v58 = vadd.f32 %v247_v54, %v246_v52 }
  0x4b   : > { %v286_v48 = vmax.f32 %v266_v43, 1e-16  ;;  %557 = vrsqrt.f32 %v285_v44  ;;  %v292_v51 = vmax.f32 %v284_v49, 1e-16 }
  0x4c   : > { %559 = vrsqrt.f32 %v291_v46 }
  0x4d   : > { %561 = vrsqrt.f32 %v286_v48 }
  0x4e   : > { %563 = vrsqrt.f32 %v292_v51 }
  0x58   : > { %v558_v59 = vpop.eup %557 }
  0x59   : > { %v560_v60 = vpop.eup %559  ;;  %v289_v61 = vmul.f32 %v558_v59, %v241_v55 }
  0x5a   : > { %v562_v62 = vpop.eup %561 }
  0x5b   : > { %v290_v3 = vmul.f32 %v562_v62, %v248_v58  ;;  %v295_v4 = vmul.f32 %v560_v60, %v289_v61  ;;  %v564_v5 = vpop.eup %563 }
  0x5d   : > { %v296_v6 = vmul.f32 %v564_v5, %v290_v3 }
  0x5f   : > { %v300_v8 = vcombine.low %v295_v4, %v296_v6 }
  0x61   : > { %v307_v9 = vrot.slane %v300_v8, %v306_v7 }
  0x63   : > { %v314_v11 = vrot.slane %v307_v9, %v306_v7 }
  0x65   : > { %v316_v12 = vadd.f32 %v314_v11, %v297_v10 }
  0x67   : > { %321 = vst.msk [vmem:[#allocation2] sm:$0x3] %vm849_vm0, %v316_v12 }
  0x6e   : > { %v325_v15 = vld [vmem:[#allocation2] sm:$0x3] }
  0x6f   : > { %v330_v16 = vrot.slane %v325_v15, %v329_v13  ;;  %v334_v0 = vrot.slane %v325_v15, %v333_v14 }
  0x71   : > { %v338_v17 = vsel %vm337_vm2, %v330_v16, 0.0  ;;  %v339_v18 = vsel %vm337_vm2, %v334_v0, 0.0 }
  0x72   : > { %v340_v19 = vadd.f32 %v339_v18, %v338_v17 }
  0x74   : > { %341 = vadd.xlane.f32.xlu0 %v340_v19 }
  0xfd   : > { %v342_v20 = vpop.xlane.xlu0 %341 }
  0xfe   : > { %v343_v21 = vrot.slane %v342_v20, 4 }
 0x100   : > { %v344_v22 = vadd.f32 %v343_v21, %v342_v20 }
 0x102   : > { %v345_v23 = vrot.slane %v344_v22, 2 }
 0x104   : > { %v346_v1 = vadd.f32 %v345_v23, %v344_v22 }
 0x106   : > { %v347_v24 = vrot.slane %v346_v1, 1 }
 0x108   : > { %v348_v25 = vadd.f32 %v347_v24, %v346_v1 }
 0x10a   : > { %486 = vpush %v348_v25 }
 0x13b   : > { %s487_s20 = spop %486 }
 0x13c   : > { %v350_v26 = vstv %s487_s20 }
 0x13d   : > { %351 = vst [vmem:[%s216_s21] sm:$0x1] %v350_v26 }
 0x13e   : > { %634 = shalt.err (!%p631_p6)
}
 0x13f   : > { %s635_s6 = scalar_lea.hbm %s363_s3, 16  ;;  %s639_s27 = scalar_lea.hbm %s913_s2, 32 }
 0x140   : > { %p636_p7 = scmp.ne.s32.totalorder %s363_s3, %s635_s6  ;;  %p640_p4 = scmp.lt.s32.totalorder %s363_s3, %s913_s2 }
 0x141   : > { %p641_p10 = scmp.lt.s32.totalorder %s639_s27, %s635_s6 }
 0x142   : > { %p637_p1 = pnand %p636_p7, %p778_p9 }
 0x143   : > { %p642_p8 = por %p641_p10, %p640_p4 }
 0x144   : > { %p638_p2 = pneg %p637_p1 }
 0x146   : > { %p643_p0 = pnand %p642_p8, %p638_p2 }
 0x148   : > { %646 = shalt.err (!%p643_p0)
}
 0x149   : > { %492 = dma.vmem_to_hbm [thread:$0]  (%p778_p9), %s866_s18, 16, %s363_s3, %s353_s7  }
 0x14a PF: > { %s377_s16 = sand.u32 1, %s685_s9   ;;  %p922_p3 = scmp.ge.s32.totalorder %s705_s14, 2 }
 0x14b   : > { %s378_s21 = scalar_lea.sflag [#allocation5], %s377_s16 }
 0x14c   : > { %p502_p13 = pnand %p922_p3, %p785_p11 }
 0x14e   : > { %p503_p5 = pneg %p502_p13 }
 0x150   : > { %680 = dma.done.wait (%p503_p5), %s378_s21, 16  }
 0x151   : > { %682 = vsyncadd (%p503_p5), %s378_s21, 4294967280  ;;  %s21_s14 = sadd.s32 1, %s705_s14   ;;  %s923_s9 = smov %s689_s10 }
 0x152   : > { %p18_p12 = scmp.ge.s32.totalorder %s21_s14, 4   ;;  %s924_s10 = smov %s693_s11 }
 0x153   : > { %s925_s11 = smov %s783_s23  ;;  %s926_s12 = smov %s701_s13 }
 0x154   : > { %s927_s13 = smov %s929_s17  ;;  %20 = sbr.rel (!%p18_p12) target bundleno = 8 (0x8), region = 94 }
 0x159   :  { %382 = vsyncpa [#allocation4], 1 }
 0x15a   :  { %384 = vsyncpa [#allocation4 + $0x1], 1 }
 0x15b   :  { %385 = vsyncpa [#allocation7], 1 }
 0x15c   :  { %387 = vsyncpa [#allocation7 + $0x1], 1 }
 0x15d   :  { %388 = vsyncpa [#allocation5], 1 }
 0x15e   :  { %390 = vsyncpa [#allocation5 + $0x1], 1 }

</bundles_post_ra>
